<compile_context>
chip_gen: v6e
topology: v6e:2x2x1
jax: 0.10.0
libtpu: 0.0.40
codegen_flags: <defaults>
</compile_context>

<pallas_src>
import math
import functools

import jax
import jax.numpy as jnp
from jax.experimental import pallas as pl
from jax.experimental.pallas import tpu as pltpu


def _pick_k_tile(S):
    """Largest of {512, 256, 128} dividing S, else the full length."""
    for t in (512, 256, 128):
        if S % t == 0:
            return t
    return S


def _mha_head_kernel(lens_ref,                     # SMEM scalar prefetch: (B,) int32
                     xq_ref, xk_ref, xv_ref,       # (1, S, d_model)
                     wq_ref, bq_ref,               # (1, d_model, dQ), (1, 1, dQ)
                     wk_ref, bk_ref,               # (1, d_model, dK), (1, 1, dK)
                     wv_ref, bv_ref,               # (1, d_model, dV), (1, 1, dV)
                     wo_ref, bo_ref,               # (1, dV, d_model), (1, d_model)
                     out_ref,                      # (1, S, d_model)
                     acc_ref,                      # VMEM scratch (S, d_model) f32
                     *, inv_scale, k_tile):
    b = pl.program_id(0)
    h = pl.program_id(1)
    S = xq_ref.shape[1]
    d_v = wv_ref.shape[2]

    # Zero the per-batch output accumulator on the first head.
    @pl.when(h == 0)
    def _init():
        acc_ref[...] = jnp.zeros_like(acc_ref)

    xq = xq_ref[0]                     # (S, d_model)
    xk = xk_ref[0]
    xv = xv_ref[0]
    wq = wq_ref[0]                     # (d_model, dQ)
    wk = wk_ref[0]
    wv = wv_ref[0]
    wo = wo_ref[0]                     # (dV, d_model)

    # Per-head projections (2-D MXU matmuls, f32 accumulation).
    # 1/scale is folded into Q (S*dQ muls instead of S*S).
    q = (jnp.dot(xq, wq, preferred_element_type=jnp.float32) + bq_ref[0]) * inv_scale
    k = jnp.dot(xk, wk, preferred_element_type=jnp.float32) + bk_ref[0]
    v = jnp.dot(xv, wv, preferred_element_type=jnp.float32) + bv_ref[0]

    # Additive key-length mask: lane-aligned (1, S), large finite negative
    # (avoids NaN when a row has every key masked).
    length = lens_ref[b]
    key_pos = jax.lax.broadcasted_iota(jnp.int32, (1, S), 1)
    mask_bias = jnp.where(key_pos >= length, -1e30, 0.0).astype(jnp.float32)

    # Online softmax over key tiles (flash-attention style).
    m = jnp.full((S, 1), -1e30, dtype=jnp.float32)
    l = jnp.zeros((S, 1), dtype=jnp.float32)
    acc = jnp.zeros((S, d_v), dtype=jnp.float32)

    num_kb = S // k_tile
    for j in range(num_kb):                     # static trip count
        k_t = k[j * k_tile:(j + 1) * k_tile, :]             # (Tk, dK)
        v_t = v[j * k_tile:(j + 1) * k_tile, :]             # (Tk, dV)
        s = jax.lax.dot_general(q, k_t, (((1,), (1,)), ((), ())),
                                preferred_element_type=jnp.float32)  # (S, Tk)
        s = s + mask_bias[:, j * k_tile:(j + 1) * k_tile]
        m_new = jnp.maximum(m, jnp.max(s, axis=-1, keepdims=True))
        alpha = jnp.exp(m - m_new)
        p = jnp.exp(s - m_new)
        l = alpha * l + jnp.sum(p, axis=-1, keepdims=True)
        acc = alpha * acc + jnp.dot(p, v_t, preferred_element_type=jnp.float32)
        m = m_new

    # Softmax denominator via EUP reciprocal (approx) — off the VPU.
    ctx = acc * pl.reciprocal(l, approx=True)                # (S, dV)

    # Per-head slice of the output projection, accumulated over heads.
    head_out = jnp.dot(ctx, wo, preferred_element_type=jnp.float32)  # (S, d_model)
    acc_ref[...] += head_out

    @pl.when(h == pl.num_programs(1) - 1)
    def _finalize():
        out_ref[0] = (acc_ref[...] + bo_ref[...]).astype(out_ref.dtype)


def multi_head_attention(x_q, x_k, x_v, params, *, numhead, d_q, d_k, d_v,
                         src_batch_lens=None):
    """Pallas implementation of MultiHeadAttention.forward (eval mode)."""
    B, S, d_model = x_q.shape
    inv_scale = 1.0 / math.sqrt(d_k)

    wq, bq, wk, bk, wv, bv, wo, bo = params
    # Head-major weight layout so each grid step reads a full-extent 2-D slab.
    wqh = wq.reshape(d_model, numhead, d_q).transpose(1, 0, 2)   # (H, d_model, dQ)
    wkh = wk.reshape(d_model, numhead, d_k).transpose(1, 0, 2)
    wvh = wv.reshape(d_model, numhead, d_v).transpose(1, 0, 2)
    woh = wo.reshape(numhead, d_v, d_model)                      # (H, dV, d_model)
    bqh = bq.reshape(numhead, 1, d_q)
    bkh = bk.reshape(numhead, 1, d_k)
    bvh = bv.reshape(numhead, 1, d_v)
    bo2 = bo.reshape(1, d_model)

    if src_batch_lens is None:
        lens = jnp.full((B,), S, dtype=jnp.int32)
    else:
        lens = jnp.asarray(src_batch_lens, dtype=jnp.int32)

    k_tile = _pick_k_tile(S)

    kernel = functools.partial(_mha_head_kernel, inv_scale=inv_scale, k_tile=k_tile)

    x_spec = pl.BlockSpec((1, S, d_model), lambda b, h, lens_ref: (b, 0, 0))

    def head_spec(arr):
        return pl.BlockSpec((1,) + arr.shape[1:], lambda b, h, lens_ref: (h, 0, 0))

    grid_spec = pltpu.PrefetchScalarGridSpec(
        num_scalar_prefetch=1,
        grid=(B, numhead),
        in_specs=[
            x_spec, x_spec, x_spec,
            head_spec(wqh), head_spec(bqh),
            head_spec(wkh), head_spec(bkh),
            head_spec(wvh), head_spec(bvh),
            head_spec(woh),
            pl.BlockSpec((1, d_model), lambda b, h, lens_ref: (0, 0)),
        ],
        out_specs=pl.BlockSpec((1, S, d_model), lambda b, h, lens_ref: (b, 0, 0)),
        scratch_shapes=[pltpu.VMEM((S, d_model), jnp.float32)],
    )

    # Explicit VMEM budget with headroom (default scoped limit is well below
    # physical; cap below v7x's 64 MiB).
    itemsize = jnp.dtype(x_q.dtype).itemsize
    bytes_x = 2 * 3 * S * d_model * itemsize                       # double-buffered inputs
    bytes_w = 2 * (d_model * (d_q + d_k + d_v) + (d_q + d_k + d_v)
                   + d_v * d_model + d_model) * 4                  # per-head weight slices
    bytes_tmp = (S * d_model + 2 * S * k_tile + S * (d_q + d_k + 2 * d_v)) * 4
    vmem_limit = int(min(56 << 20, max(32 << 20, 4 * (bytes_x + bytes_w + bytes_tmp))))

    return pl.pallas_call(
        kernel,
        out_shape=jax.ShapeDtypeStruct((B, S, d_model), x_q.dtype),
        grid_spec=grid_spec,
        compiler_params=pltpu.CompilerParams(
            dimension_semantics=("parallel", "arbitrary"),
            vmem_limit_bytes=vmem_limit),
    )(lens, x_q, x_k, x_v, wqh, bqh, wkh, bkh, wvh, bvh, woh, bo2)


def _reference_mha(x_q, x_k, x_v, params, *, numhead, d_q, d_k, d_v,
                   src_batch_lens=None):
    """Pure-JAX reference mirroring the PyTorch forward (eval mode)."""
    B, S, d_model = x_q.shape
    wq, bq, wk, bk, wv, bv, wo, bo = params
    scale = math.sqrt(d_k)

    Q = (x_q @ wq + bq).reshape(B, S, numhead, d_q).transpose(0, 2, 1, 3)
    K = (x_k @ wk + bk).reshape(B, S, numhead, d_k).transpose(0, 2, 1, 3)
    V = (x_v @ wv + bv).reshape(B, S, numhead, d_v).transpose(0, 2, 1, 3)

    scores = jnp.einsum('bhqd,bhkd->bhqk', Q, K) / scale
    if src_batch_lens is not None:
        lens = jnp.asarray(src_batch_lens, dtype=jnp.int32)
        key_pos = jnp.arange(S)[None, None, None, :]
        mask = key_pos >= lens[:, None, None, None]
        scores = jnp.where(mask, -jnp.inf, scores)
    attn = jax.nn.softmax(scores, axis=-1)
    out = jnp.einsum('bhqk,bhkd->bhqd', attn, V)
    out = out.transpose(0, 2, 1, 3).reshape(B, S, numhead * d_v)
    return out @ wo + bo


if __name__ == "__main__":
    # Small shapes consistent with the module.
    B, S = 2, 8
    d_model = 32
    numhead = 4
    d_q = d_k = d_v = 8
    dropout = 0.1  # unused at inference

    key = jax.random.PRNGKey(0)
    keys = jax.random.split(key, 12)

    def lin_init(kw, kb, fan_in, fan_out):
        bound = 1.0 / math.sqrt(fan_in)
        w = jax.random.uniform(kw, (fan_in, fan_out), jnp.float32, -bound, bound)
        b = jax.random.uniform(kb, (fan_out,), jnp.float32, -bound, bound)
        return w, b

    wq, bq = lin_init(keys[0], keys[1], d_model, d_q * numhead)
    wk, bk = lin_init(keys[2], keys[3], d_model, d_k * numhead)
    wv, bv = lin_init(keys[4], keys[5], d_model, d_v * numhead)
    wo, bo = lin_init(keys[6], keys[7], d_v * numhead, d_model)
    params = (wq, bq, wk, bk, wv, bv, wo, bo)

    x_q = jax.random.normal(keys[8], (B, S, d_model), jnp.float32)
    x_k = jax.random.normal(keys[9], (B, S, d_model), jnp.float32)
    x_v = jax.random.normal(keys[10], (B, S, d_model), jnp.float32)
    src_batch_lens = jnp.array([8, 5], dtype=jnp.int32)

    out = multi_head_attention(x_q, x_k, x_v, params,
                               numhead=numhead, d_q=d_q, d_k=d_k, d_v=d_v,
                               src_batch_lens=src_batch_lens)
    out = jax.block_until_ready(out)

    ref = _reference_mha(x_q, x_k, x_v, params,
                         numhead=numhead, d_q=d_q, d_k=d_k, d_v=d_v,
                         src_batch_lens=src_batch_lens)
    assert out.shape == (B, S, d_model)
    # Tolerance accounts for the approximate EUP reciprocal in the softmax
    # normalization (pl.reciprocal(approx=True)).
    assert jnp.allclose(out, ref, atol=1e-2, rtol=1e-2), "mismatch vs JAX reference"

    print("KERNEL_OK")
</pallas_src>

<mosaic_0001>
module attributes {stable_mosaic.version = 11 : i64} {
  func.func @_mha_head_kernel(%arg0: i32, %arg1: i32, %arg2: memref<2xi32, #tpu.memory_space<smem>>, %arg3: memref<1x8x32xf32, #tpu.memory_space<vmem>>, %arg4: memref<1x8x32xf32, #tpu.memory_space<vmem>>, %arg5: memref<1x8x32xf32, #tpu.memory_space<vmem>>, %arg6: memref<1x32x8xf32, #tpu.memory_space<vmem>>, %arg7: memref<1x1x8xf32, #tpu.memory_space<vmem>>, %arg8: memref<1x32x8xf32, #tpu.memory_space<vmem>>, %arg9: memref<1x1x8xf32, #tpu.memory_space<vmem>>, %arg10: memref<1x32x8xf32, #tpu.memory_space<vmem>>, %arg11: memref<1x1x8xf32, #tpu.memory_space<vmem>>, %arg12: memref<1x8x32xf32, #tpu.memory_space<vmem>>, %arg13: memref<1x32xf32, #tpu.memory_space<vmem>>, %arg14: memref<1x8x32xf32, #tpu.memory_space<vmem>>, %arg15: memref<8x32xf32, #tpu.memory_space<vmem>>) attributes {dimension_semantics = [#tpu.dimension_semantics<parallel>, #tpu.dimension_semantics<arbitrary>], iteration_bounds = array<i64: 2, 4>, scalar_prefetch = 1 : i64, scratch_operands = 1 : i64, tpu.core_type = #tpu.core_type<tc>, window_params = [{transform_indices = @transform_0, window_bounds = array<i64: 1, 8, 32>}, {transform_indices = @transform_1, window_bounds = array<i64: 1, 8, 32>}, {transform_indices = @transform_2, window_bounds = array<i64: 1, 8, 32>}, {transform_indices = @transform_3, window_bounds = array<i64: 1, 32, 8>}, {transform_indices = @transform_4, window_bounds = array<i64: 1, 1, 8>}, {transform_indices = @transform_5, window_bounds = array<i64: 1, 32, 8>}, {transform_indices = @transform_6, window_bounds = array<i64: 1, 1, 8>}, {transform_indices = @transform_7, window_bounds = array<i64: 1, 32, 8>}, {transform_indices = @transform_8, window_bounds = array<i64: 1, 1, 8>}, {transform_indices = @transform_9, window_bounds = array<i64: 1, 8, 32>}, {pipeline_mode = #tpu.pipeline_mode<synchronous>, transform_indices = @transform_10, window_bounds = array<i64: 1, 32>}, {transform_indices = @transform_11, window_bounds = array<i64: 1, 8, 32>}]} {
    %c0_i32 = arith.constant 0 : i32
    %0 = arith.cmpi eq, %arg1, %c0_i32 : i32
    %1 = arith.extui %0 : i1 to i32
    %c0_i32_0 = arith.constant 0 : i32
    %2 = arith.cmpi ne, %1, %c0_i32_0 : i32
    scf.if %2 {
      %cst_48 = arith.constant 0.000000e+00 : f32
      %74 = vector.broadcast %cst_48 : f32 to vector<8x32xf32>
      %c0_49 = arith.constant 0 : index
      %c0_50 = arith.constant 0 : index
      %75 = vector.load %arg15[%c0_49, %c0_50] : memref<8x32xf32, #tpu.memory_space<vmem>>, vector<8x32xf32>
      tpu.vector_store %arg15[%c0_49, %c0_50], %74 {strides = array<i32>} : memref<8x32xf32, #tpu.memory_space<vmem>>, vector<8x32xf32>,
    } else {
    }
    %c0 = arith.constant 0 : index
    %c0_1 = arith.constant 0 : index
    %c0_2 = arith.constant 0 : index
    %3 = vector.load %arg3[%c0, %c0_1, %c0_2] : memref<1x8x32xf32, #tpu.memory_space<vmem>>, vector<1x8x32xf32>
    %4 = vector.shape_cast %3 : vector<1x8x32xf32> to vector<8x32xf32>
    %c0_3 = arith.constant 0 : index
    %c0_4 = arith.constant 0 : index
    %c0_5 = arith.constant 0 : index
    %5 = vector.load %arg4[%c0_3, %c0_4, %c0_5] : memref<1x8x32xf32, #tpu.memory_space<vmem>>, vector<1x8x32xf32>
    %6 = vector.shape_cast %5 : vector<1x8x32xf32> to vector<8x32xf32>
    %c0_6 = arith.constant 0 : index
    %c0_7 = arith.constant 0 : index
    %c0_8 = arith.constant 0 : index
    %7 = vector.load %arg5[%c0_6, %c0_7, %c0_8] : memref<1x8x32xf32, #tpu.memory_space<vmem>>, vector<1x8x32xf32>
    %8 = vector.shape_cast %7 : vector<1x8x32xf32> to vector<8x32xf32>
    %c0_9 = arith.constant 0 : index
    %c0_10 = arith.constant 0 : index
    %c0_11 = arith.constant 0 : index
    %9 = vector.load %arg6[%c0_9, %c0_10, %c0_11] : memref<1x32x8xf32, #tpu.memory_space<vmem>>, vector<1x32x8xf32>
    %10 = vector.shape_cast %9 : vector<1x32x8xf32> to vector<32x8xf32>
    %c0_12 = arith.constant 0 : index
    %c0_13 = arith.constant 0 : index
    %c0_14 = arith.constant 0 : index
    %11 = vector.load %arg8[%c0_12, %c0_13, %c0_14] : memref<1x32x8xf32, #tpu.memory_space<vmem>>, vector<1x32x8xf32>
    %12 = vector.shape_cast %11 : vector<1x32x8xf32> to vector<32x8xf32>
    %c0_15 = arith.constant 0 : index
    %c0_16 = arith.constant 0 : index
    %c0_17 = arith.constant 0 : index
    %13 = vector.load %arg10[%c0_15, %c0_16, %c0_17] : memref<1x32x8xf32, #tpu.memory_space<vmem>>, vector<1x32x8xf32>
    %14 = vector.shape_cast %13 : vector<1x32x8xf32> to vector<32x8xf32>
    %c0_18 = arith.constant 0 : index
    %c0_19 = arith.constant 0 : index
    %c0_20 = arith.constant 0 : index
    %15 = vector.load %arg12[%c0_18, %c0_19, %c0_20] : memref<1x8x32xf32, #tpu.memory_space<vmem>>, vector<1x8x32xf32>
    %16 = vector.shape_cast %15 : vector<1x8x32xf32> to vector<8x32xf32>
    %cst = arith.constant dense<0.000000e+00> : vector<8x8xf32>
    %17 = tpu.matmul %4, %10, %cst {dimension_numbers = #tpu.dot_dimension_numbers<[1], [0], [0], [1], [0, 0, 1, 1], [], []>} : vector<8x32xf32>, vector<32x8xf32>, vector<8x8xf32> -> vector<8x8xf32>
    %c0_21 = arith.constant 0 : index
    %c0_22 = arith.constant 0 : index
    %c0_23 = arith.constant 0 : index
    %18 = vector.load %arg7[%c0_21, %c0_22, %c0_23] : memref<1x1x8xf32, #tpu.memory_space<vmem>>, vector<1x1x8xf32>
    %19 = vector.shape_cast %18 : vector<1x1x8xf32> to vector<1x8xf32>
    %20 = vector.broadcast %19 : vector<1x8xf32> to vector<8x8xf32>
    %21 = arith.addf %17, %20 : vector<8x8xf32>
    %cst_24 = arith.constant 0.353553385 : f32
    %22 = vector.broadcast %cst_24 : f32 to vector<8x8xf32>
    %23 = arith.mulf %21, %22 : vector<8x8xf32>
    %cst_25 = arith.constant dense<0.000000e+00> : vector<8x8xf32>
    %24 = tpu.matmul %6, %12, %cst_25 {dimension_numbers = #tpu.dot_dimension_numbers<[1], [0], [0], [1], [0, 0, 1, 1], [], []>} : vector<8x32xf32>, vector<32x8xf32>, vector<8x8xf32> -> vector<8x8xf32>
    %c0_26 = arith.constant 0 : index
    %c0_27 = arith.constant 0 : index
    %c0_28 = arith.constant 0 : index
    %25 = vector.load %arg9[%c0_26, %c0_27, %c0_28] : memref<1x1x8xf32, #tpu.memory_space<vmem>>, vector<1x1x8xf32>
    %26 = vector.shape_cast %25 : vector<1x1x8xf32> to vector<1x8xf32>
    %27 = vector.broadcast %26 : vector<1x8xf32> to vector<8x8xf32>
    %28 = arith.addf %24, %27 : vector<8x8xf32>
    %cst_29 = arith.constant dense<0.000000e+00> : vector<8x8xf32>
    %29 = tpu.matmul %8, %14, %cst_29 {dimension_numbers = #tpu.dot_dimension_numbers<[1], [0], [0], [1], [0, 0, 1, 1], [], []>} : vector<8x32xf32>, vector<32x8xf32>, vector<8x8xf32> -> vector<8x8xf32>
    %c0_30 = arith.constant 0 : index
    %c0_31 = arith.constant 0 : index
    %c0_32 = arith.constant 0 : index
    %30 = vector.load %arg11[%c0_30, %c0_31, %c0_32] : memref<1x1x8xf32, #tpu.memory_space<vmem>>, vector<1x1x8xf32>
    %31 = vector.shape_cast %30 : vector<1x1x8xf32> to vector<1x8xf32>
    %32 = vector.broadcast %31 : vector<1x8xf32> to vector<8x8xf32>
    %33 = arith.addf %29, %32 : vector<8x8xf32>
    %34 = arith.index_cast %arg0 : i32 to index
    %35 = memref.load %arg2[%34] : memref<2xi32, #tpu.memory_space<smem>>
    %36 = tpu.iota {dimensions = array<i32: 1>} : vector<1x8xi32>
    %37 = vector.broadcast %35 : i32 to vector<1x8xi32>
    %38 = arith.cmpi sge, %36, %37 : vector<1x8xi32>
    %cst_33 = arith.constant -1.000000e+30 : f32
    %cst_34 = arith.constant 0.000000e+00 : f32
    %39 = vector.broadcast %cst_33 : f32 to vector<1x8xf32>
    %40 = vector.broadcast %cst_34 : f32 to vector<1x8xf32>
    %41 = arith.select %38, %39, %40 : vector<1x8xi1>, vector<1x8xf32>
    %cst_35 = arith.constant -1.000000e+30 : f32
    %42 = vector.broadcast %cst_35 : f32 to vector<8x1xf32>
    %cst_36 = arith.constant 0.000000e+00 : f32
    %43 = vector.broadcast %cst_36 : f32 to vector<8x1xf32>
    %cst_37 = arith.constant 0.000000e+00 : f32
    %44 = vector.broadcast %cst_37 : f32 to vector<8x8xf32>
    %cst_38 = arith.constant dense<0.000000e+00> : vector<8x8xf32>
    %45 = tpu.matmul %23, %28, %cst_38 {dimension_numbers = #tpu.dot_dimension_numbers<[1], [1], [0], [0], [0, 0, 1, 0], [], []>} : vector<8x8xf32>, vector<8x8xf32>, vector<8x8xf32> -> vector<8x8xf32>
    %46 = vector.broadcast %41 : vector<1x8xf32> to vector<8x8xf32>
    %47 = arith.addf %45, %46 : vector<8x8xf32>
    %cst_39 = arith.constant dense<0xFF800000> : vector<8xf32>
    %48 = vector.multi_reduction <maximumf>, %47, %cst_39 [1] : vector<8x8xf32> to vector<8xf32>
    %49 = vector.shape_cast %48 : vector<8xf32> to vector<8x1xf32>
    %50 = arith.maximumf %42, %49 : vector<8x1xf32>
    %51 = arith.subf %42, %50 : vector<8x1xf32>
    %52 = math.exp %51 : vector<8x1xf32>
    %53 = vector.broadcast %50 : vector<8x1xf32> to vector<8x8xf32>
    %54 = arith.subf %47, %53 : vector<8x8xf32>
    %55 = math.exp %54 : vector<8x8xf32>
    %56 = arith.mulf %52, %43 : vector<8x1xf32>
    %cst_40 = arith.constant dense<0.000000e+00> : vector<8xf32>
    %57 = vector.multi_reduction <add>, %55, %cst_40 [1] : vector<8x8xf32> to vector<8xf32>
    %58 = vector.shape_cast %57 : vector<8xf32> to vector<8x1xf32>
    %59 = arith.addf %56, %58 : vector<8x1xf32>
    %60 = vector.broadcast %52 : vector<8x1xf32> to vector<8x8xf32>
    %61 = arith.mulf %60, %44 : vector<8x8xf32>
    %cst_41 = arith.constant dense<0.000000e+00> : vector<8x8xf32>
    %62 = tpu.matmul %55, %33, %cst_41 {dimension_numbers = #tpu.dot_dimension_numbers<[1], [0], [0], [1], [0, 0, 1, 1], [], []>} : vector<8x8xf32>, vector<8x8xf32>, vector<8x8xf32> -> vector<8x8xf32>
    %63 = arith.addf %61, %62 : vector<8x8xf32>
    %64 = tpu.reciprocal %59 {approx = true} : vector<8x1xf32> -> vector<8x1xf32>
    %65 = vector.broadcast %64 : vector<8x1xf32> to vector<8x8xf32>
    %66 = arith.mulf %63, %65 : vector<8x8xf32>
    %cst_42 = arith.constant dense<0.000000e+00> : vector<8x32xf32>
    %67 = tpu.matmul %66, %16, %cst_42 {dimension_numbers = #tpu.dot_dimension_numbers<[1], [0], [0], [1], [0, 0, 1, 1], [], []>} : vector<8x8xf32>, vector<8x32xf32>, vector<8x32xf32> -> vector<8x32xf32>
    %c0_43 = arith.constant 0 : index
    %c0_44 = arith.constant 0 : index
    %68 = vector.load %arg15[%c0_43, %c0_44] : memref<8x32xf32, #tpu.memory_space<vmem>>, vector<8x32xf32>
    %69 = arith.addf %68, %67 : vector<8x32xf32>
    %c0_45 = arith.constant 0 : index
    %c0_46 = arith.constant 0 : index
    %70 = vector.load %arg15[%c0_45, %c0_46] : memref<8x32xf32, #tpu.memory_space<vmem>>, vector<8x32xf32>
    tpu.vector_store %arg15[%c0_45, %c0_46], %69 {strides = array<i32>} : memref<8x32xf32, #tpu.memory_space<vmem>>, vector<8x32xf32>,
    %c3_i32 = arith.constant 3 : i32
    %71 = arith.cmpi eq, %arg1, %c3_i32 : i32
    %72 = arith.extui %71 : i1 to i32
    %c0_i32_47 = arith.constant 0 : i32
    %73 = arith.cmpi ne, %72, %c0_i32_47 : i32
    scf.if %73 {
      %c0_48 = arith.constant 0 : index
      %c0_49 = arith.constant 0 : index
      %74 = vector.load %arg15[%c0_48, %c0_49] : memref<8x32xf32, #tpu.memory_space<vmem>>, vector<8x32xf32>
      %c0_50 = arith.constant 0 : index
      %c0_51 = arith.constant 0 : index
      %75 = vector.load %arg13[%c0_50, %c0_51] : memref<1x32xf32, #tpu.memory_space<vmem>>, vector<1x32xf32>
      %76 = vector.broadcast %75 : vector<1x32xf32> to vector<8x32xf32>
      %77 = arith.addf %74, %76 : vector<8x32xf32>
      %c0_52 = arith.constant 0 : index
      %c0_53 = arith.constant 0 : index
      %c0_54 = arith.constant 0 : index
      %78 = vector.load %arg14[%c0_52, %c0_53, %c0_54] : memref<1x8x32xf32, #tpu.memory_space<vmem>>, vector<1x8x32xf32>
      %79 = vector.shape_cast %78 : vector<1x8x32xf32> to vector<8x32xf32>
      %80 = vector.shape_cast %77 : vector<8x32xf32> to vector<1x8x32xf32>
      tpu.vector_store %arg14[%c0_52, %c0_53, %c0_54], %80 {strides = array<i32>} : memref<1x8x32xf32, #tpu.memory_space<vmem>>, vector<1x8x32xf32>,
    } else {
    }
    return
  }
  func.func @transform_0(%arg0: i32, %arg1: i32, %arg2: memref<2xi32, #tpu.memory_space<smem>>) -> (i32, i32, i32) {
    %c0_i32 = arith.constant 0 : i32
    %c0_i32_0 = arith.constant 0 : i32
    %c0_i32_1 = arith.constant 0 : i32
    return %arg0, %c0_i32, %c0_i32_0 : i32, i32, i32
  }
  func.func @transform_1(%arg0: i32, %arg1: i32, %arg2: memref<2xi32, #tpu.memory_space<smem>>) -> (i32, i32, i32) {
    %c0_i32 = arith.constant 0 : i32
    %c0_i32_0 = arith.constant 0 : i32
    %c0_i32_1 = arith.constant 0 : i32
    return %arg0, %c0_i32, %c0_i32_0 : i32, i32, i32
  }
  func.func @transform_2(%arg0: i32, %arg1: i32, %arg2: memref<2xi32, #tpu.memory_space<smem>>) -> (i32, i32, i32) {
    %c0_i32 = arith.constant 0 : i32
    %c0_i32_0 = arith.constant 0 : i32
    %c0_i32_1 = arith.constant 0 : i32
    return %arg0, %c0_i32, %c0_i32_0 : i32, i32, i32
  }
  func.func @transform_3(%arg0: i32, %arg1: i32, %arg2: memref<2xi32, #tpu.memory_space<smem>>) -> (i32, i32, i32) {
    %c0_i32 = arith.constant 0 : i32
    %c0_i32_0 = arith.constant 0 : i32
    %c0_i32_1 = arith.constant 0 : i32
    return %arg1, %c0_i32, %c0_i32_0 : i32, i32, i32
  }
  func.func @transform_4(%arg0: i32, %arg1: i32, %arg2: memref<2xi32, #tpu.memory_space<smem>>) -> (i32, i32, i32) {
    %c0_i32 = arith.constant 0 : i32
    %c0_i32_0 = arith.constant 0 : i32
    %c0_i32_1 = arith.constant 0 : i32
    return %arg1, %c0_i32, %c0_i32_0 : i32, i32, i32
  }
  func.func @transform_5(%arg0: i32, %arg1: i32, %arg2: memref<2xi32, #tpu.memory_space<smem>>) -> (i32, i32, i32) {
    %c0_i32 = arith.constant 0 : i32
    %c0_i32_0 = arith.constant 0 : i32
    %c0_i32_1 = arith.constant 0 : i32
    return %arg1, %c0_i32, %c0_i32_0 : i32, i32, i32
  }
  func.func @transform_6(%arg0: i32, %arg1: i32, %arg2: memref<2xi32, #tpu.memory_space<smem>>) -> (i32, i32, i32) {
    %c0_i32 = arith.constant 0 : i32
    %c0_i32_0 = arith.constant 0 : i32
    %c0_i32_1 = arith.constant 0 : i32
    return %arg1, %c0_i32, %c0_i32_0 : i32, i32, i32
  }
  func.func @transform_7(%arg0: i32, %arg1: i32, %arg2: memref<2xi32, #tpu.memory_space<smem>>) -> (i32, i32, i32) {
    %c0_i32 = arith.constant 0 : i32
    %c0_i32_0 = arith.constant 0 : i32
    %c0_i32_1 = arith.constant 0 : i32
    return %arg1, %c0_i32, %c0_i32_0 : i32, i32, i32
  }
  func.func @transform_8(%arg0: i32, %arg1: i32, %arg2: memref<2xi32, #tpu.memory_space<smem>>) -> (i32, i32, i32) {
    %c0_i32 = arith.constant 0 : i32
    %c0_i32_0 = arith.constant 0 : i32
    %c0_i32_1 = arith.constant 0 : i32
    return %arg1, %c0_i32, %c0_i32_0 : i32, i32, i32
  }
  func.func @transform_9(%arg0: i32, %arg1: i32, %arg2: memref<2xi32, #tpu.memory_space<smem>>) -> (i32, i32, i32) {
    %c0_i32 = arith.constant 0 : i32
    %c0_i32_0 = arith.constant 0 : i32
    %c0_i32_1 = arith.constant 0 : i32
    return %arg1, %c0_i32, %c0_i32_0 : i32, i32, i32
  }
  func.func @transform_10(%arg0: i32, %arg1: i32, %arg2: memref<2xi32, #tpu.memory_space<smem>>) -> (i32, i32) {
    %c0_i32 = arith.constant 0 : i32
    %c0_i32_0 = arith.constant 0 : i32
    %c0_i32_1 = arith.constant 0 : i32
    return %c0_i32, %c0_i32_0 : i32, i32
  }
  func.func @transform_11(%arg0: i32, %arg1: i32, %arg2: memref<2xi32, #tpu.memory_space<smem>>) -> (i32, i32, i32) {
    %c0_i32 = arith.constant 0 : i32
    %c0_i32_0 = arith.constant 0 : i32
    %c0_i32_1 = arith.constant 0 : i32
    return %arg0, %c0_i32, %c0_i32_0 : i32, i32, i32
  }
}

</mosaic_0001>

<bundles_post_ra>
// kernel: tpu_custom_call.1
= control target key start
LH: loop header
LB: loop body
LE: loop exit
PB: predicated region body
PF: predicated region fallthrough
CT: control target
= control target key end

     0   :  { %s1899_s0 = inlined_call_operand.vmem [shape: s32[2], index: 0, kind: input, shape index: {}]   ;;  %s1900_s1 = inlined_call_operand.vmem [shape: f32[2,8,32], index: 1, kind: input, shape index: {}]   ;;  %s1901_s2 = inlined_call_operand.vmem [shape: f32[2,8,32], index: 2, kind: input, shape index: {}]   ;;  %s1902_s3 = inlined_call_operand.vmem [shape: f32[2,8,32], index: 3, kind: input, shape index: {}]   ;;  %s1903_s4 = inlined_call_operand.vmem [shape: f32[4,32,8], index: 4, kind: input, shape index: {}]   ;;  %s1904_s5 = inlined_call_operand.vmem [shape: f32[4,1,8], index: 5, kind: input, shape index: {}]   ;;  %s1905_s6 = inlined_call_operand.vmem [shape: f32[4,32,8], index: 6, kind: input, shape index: {}]   ;;  %s1906_s7 = inlined_call_operand.vmem [shape: f32[4,1,8], index: 7, kind: input, shape index: {}]   ;;  %s1907_s8 = inlined_call_operand.vmem [shape: f32[4,32,8], index: 8, kind: input, shape index: {}]   ;;  %s1908_s9 = inlined_call_operand.vmem [shape: f32[4,1,8], index: 9, kind: input, shape index: {}]   ;;  %s1909_s10 = inlined_call_operand.vmem [shape: f32[4,8,32], index: 10, kind: input, shape index: {}]   ;;  %s1910_s11 = inlined_call_operand.vmem [shape: f32[1,32], index: 11, kind: input, shape index: {}]   ;;  %s1911_s12 = inlined_call_operand.hbm [shape: f32[2,8,32], index: 12, kind: output, shape index: {}]  }
   0x1   :  { %1925 = sst [smem:[#allocation20_spill]] %s1903_s4  ;;  %s17_s23 = sshll.u32 %s1899_s0, 4  ;;  %s18_s23 = int_to_ptr.vmem [resolvable:$true] %s17_s23 }
   0x2   :  { %1926 = sst [smem:[#allocation21_spill]] %s1910_s11  ;;  %s1451_s24 = scalar_lea.vmem %s18_s23, 16 }
   0x3   :  { %1927 = sst [smem:[#allocation22_spill]] %s1911_s12  ;;  %p1452_p0 = scmp.ne.s32.totalorder %s18_s23, %s1451_s24 }
   0x4   :  { %p1456_p1 = scmp.lt.s32.totalorder %s18_s23, %s18_s23  ;;  %p1457_p2 = scmp.lt.s32.totalorder %s1451_s24, %s1451_s24 }
   0x6   :  { %p1458_p3 = por %p1457_p2, %p1456_p1 }
   0x8   :  { %p1459_p4 = pnand %p1458_p3, %p1452_p0 }
   0xa   :  { %1462 = shalt.err (!%p1459_p4)  }
   0xb   :  { %s1559_s25 = smov [#allocation4]  }
   0xc   :  { %20 = dma.vmem_to_smem %s18_s23, 16, %s1559_s25, [#allocation3] }
   0xd   :  { %1521 = dma.done.wait [#allocation3], 16 }
   0xe   :  { %1522 = vsyncadd [#allocation3], 4294967280 }
   0xf   :  { %22 = sfence }
  0x10   :  { %23 = vsyncpa [#allocation6], 0 }
  0x11   :  { %25 = vsyncpa [#allocation6 + $0x1], 0  ;;  %s1632_s26 = smov 0   ;;  %s1634_s27 = smov 0  }
  0x12   :  { %s1636_s0 = smov 0   ;;  %s1638_s28 = smov 0  }
  0x13   :  { %s1640_s29 = smov 0   ;;  %s1642_s30 = smov 0  }
  0x14   :  { %s1644_s13 = smov 0   ;;  %s1646_s14 = smov 0  }
  0x15 LB: > { %1928 = sst [smem:[#allocation9_spill]] %s1529_s26  ;;  %s1265_s15 = sadd.s32 4294967295, %s1557_s14   ;;  %s1557_s14 = sphi %s1646_s14, %s31_s14   ;;  %s1553_s13 = sphi %s1644_s13, %s1961_s13   ;;  %s1549_s30 = sphi %s1642_s30, %s1960_s30   ;;  %s1545_s29 = sphi %s1640_s29, %s1959_s29   ;;  %s1541_s28 = sphi %s1638_s28, %s1958_s28   ;;  %s1537_s0 = sphi %s1636_s0, %s1957_s0   ;;  %s1533_s27 = sphi %s1634_s27, %s1956_s27   ;;  %s1529_s26 = sphi %s1632_s26, %s1955_s26  }
  0x16   : > { %1929 = sst [smem:[#allocation10_spill]] %s1533_s27  ;;  %s1266_s16 = sadd.s32 4294967294, %s1557_s14  }
  0x17   : > { %1930 = sst [smem:[#allocation11_spill]] %s1537_s0  ;;  %s40_s17 = sadd.s32 1, %s1549_s30 }
  0x18   : > { %1931 = sst [smem:[#allocation12_spill]] %s1549_s30  ;;  %p41_p5 = scmp.ge.s32.totalorder %s40_s17, 4 }
  0x19   : > { %1932 = sst [smem:[#allocation13_spill]] %s1553_s13  ;;  %s43_s18 = sadd.s32 1, %s1553_s13 }
  0x1a   : > { %1933 = sst [smem:[#allocation14_spill]] %s1557_s14  ;;  %p341_p6 = scmp.ne.s32.totalorder %s1537_s0, %s1533_s27 }
  0x1b   : > { %p342_p7 = scmp.eq.s32.totalorder %s1265_s15, 7  ;;  %s1963_s17 = smov (%p41_p5, %s40_s17), 0 }
  0x1c   : > { %1934 = sst [smem:[#allocation15_spill]] %s1963_s17  ;;  %s1965_s18 = smov (!%p41_p5, %s43_s18), %s1553_s13 }
  0x1d   : > { %p1681_p8 = por %p342_p7, %p341_p6  ;;  %p347_p9 = scmp.ne.s32.totalorder %s1533_s27, %s1529_s26 }
  0x1e   : > { %p45_p10 = scmp.ge.s32.totalorder %s1965_s18, 2  ;;  %p348_p11 = scmp.eq.s32.totalorder %s1266_s16, 7 }
  0x1f   : > { %s1935_s19 = scalar_select %p1681_p8, 1, 0 }
  0x20   : > { %p1269_p12 = scmp.ge.s32.totalorder %s1557_s14, 1  ;;  %p439_p13 = scmp.lt.s32.totalorder %s1557_s14, 9 }
  0x21   : > { %1936 = sst [smem:[#allocation16_spill]] %s1935_s19  ;;  %s1967_s18 = smov (%p45_p10, %s1965_s18), 0 }
  0x22   : > { %1937 = sst [smem:[#allocation17_spill]] %s1967_s18  ;;  %p1691_p0 = por %p348_p11, %p347_p9 }
  0x23   : > { %p440_p1 = pnand %p1269_p12, %p439_p13  ;;  %s328_s21 = ssub.s32 %s1553_s13, %s1967_s18 }
  0x24   : > { %s1938_s20 = scalar_select %p1691_p0, 1, 0 }
  0x25   : > { %s331_s22 = sadd.s32 1, %s1537_s0  ;;  %p329_p2 = scmp.eq.s32.totalorder %s328_s21, 0 }
  0x26   : > { %1939 = sst [smem:[#allocation18_spill]] %s1938_s20  ;;  %443 = sbr.rel (%p440_p1) target bundleno = 1048 (0x418), region = 64 }
  0x27   : > { %s1699_s23 = scalar_select %p329_p2, %s1537_s0, %s331_s22  }
  0x28   : > { %s1913_s24 = sand.u32 (!%p440_p1), 1, %s1533_s27   ;;  %p514_p3 = scmp.lt.s32.totalorder (!%p440_p1), %s1545_s29, 1 }
  0x29   : > { %1940 = sst [smem:[#allocation19_spill]] %s1699_s23  ;;  %s1705_s25 = sshll.u32 (!%p440_p1), %s1913_s24, 3 }
  0x2a   : > { %p526_p4 = scmp.lt.s32.totalorder (!%p440_p1), %s1541_s28, 3  ;;  %s1941_s4 = sld [smem:[#allocation20_spill]] (!%p440_p1) }
  0x2b   : > { %s515_s15 = scalar_select %p514_p3, %s1545_s29, 1 }
  0x2c   : > { %s1710_s16 = scalar_select %p526_p4, %s1541_s28, 3 }
  0x2d   : > { %s1712_s21 = sshll.u32 %s515_s15, 3  ;;  %s513_s22 = scalar_lea.vmem [#allocation5], %s1705_s25 }
  0x2e   : > { %s1298_s26 = sshll.u32 %s1710_s16, 5  ;;  %s541_s0 = scalar_lea.vmem %s1906_s7, %s1710_s16 }
  0x2f   : > { %s1739_s11 = scalar_lea.vmem %s1905_s6, %s1298_s26  ;;  %s1748_s30 = scalar_lea.vmem %s1907_s8, %s1298_s26 }
  0x30   : > { %s1730_s15 = scalar_lea.vmem %s1941_s4, %s1298_s26  ;;  %s549_s4 = scalar_lea.vmem %s1908_s9, %s1710_s16 }
  0x31   : > { %s1280_s27 = sshll.u32 %s1710_s16, 3  ;;  %p1281_p5 = scmp.ne.s32.totalorder %s1541_s28, 0 }
  0x32   : > { %s1758_s24 = scalar_lea.vmem %s1909_s10, %s1280_s27 }
  0x33   : > { %557 = sbr.rel (%p1281_p5) target bundleno = 58 (0x3a), region = 68 }
  0x38   : > { %vm558_vm0 = vcmask 261120   ;;  %v1560_v0 = vmov 0.0  }
  0x39   : > { %559 = vst.msk [vmem:[#allocation2] sm:$0xff] %vm558_vm0, %v1560_v0 }
  0x3a PF: > { %v566_v1 = vld [vmem:[%s1730_s15 + $0x18] sm:$0xff]  ;;  %v1561_v3 = vmov 0.0   ;;  %v565_v4 = vld [vmem:[%s1730_s15 + $0x10] sm:$0xff]  ;;  %v564_v6 = vld [vmem:[%s1730_s15 + $0x8] sm:$0xff]  ;;  %s1942_s18 = scalar_lea.vmem %s1900_s1, %s1712_s21  ;;  %vm583_vm1 = vcmask 261120   ;;  %s1943_s23 = scalar_lea.vmem %s1901_s2, %s1712_s21  ;;  %vm1562_vm2 = vmmov 0   ;;  %v819_v26 = vlaneseq }
  0x3b   : > { %v570_v2 = vld [vmem:[%s1739_s11 + $0x18] sm:$0xff]  ;;  %1322 = vmatprep.subr.mxu0 %v1561_v3  ;;  %1333 = vmatprep.subr.mxu1 %v1561_v3  ;;  %v569_v5 = vld [vmem:[%s1739_s11 + $0x10] sm:$0xff]  ;;  %v568_v7 = vld [vmem:[%s1739_s11 + $0x8] sm:$0xff]  ;;  %s1944_s12 = scalar_lea.vmem %s1902_s3, %s1712_s21  ;;  %vm824_vm3 = vcmask 64512   ;;  %s818_s21 = sld [smem:[#allocation4 + %s1545_s29]] }
  0x3c   : > { %1323 = vmatpush3.msra.mxu0 %v566_v1  ;;  %1334 = vmatpush3.msra.mxu1 %v570_v2  ;;  %v563_v8 = vld [vmem:[%s1730_s15] sm:$0xff]  ;;  %v574_v12 = vld [vmem:[%s1748_s30 + $0x18] sm:$0xff]  ;;  %v573_v13 = vld [vmem:[%s1748_s30 + $0x10] sm:$0xff]  ;;  %v820_v27 = vand.u32 127, %v819_v26  ;;  %p1292_p6 = scmp.ne.s32.totalorder %s1541_s28, 3 }
  0x3d   : > { %1324 = vmatprep.subr.mxu0 %v1561_v3  ;;  %1335 = vmatprep.subr.mxu1 %v1561_v3  ;;  %v567_v9 = vld [vmem:[%s1739_s11] sm:$0xff]  ;;  %v572_v14 = vld [vmem:[%s1748_s30 + $0x8] sm:$0xff] }
  0x3e   : > { %1325 = vmatpush3.msra.mxu0 %v565_v4  ;;  %1336 = vmatpush3.msra.mxu1 %v569_v5  ;;  %v560_v10 = vld [vmem:[%s1942_s18] sm:$0xff] }
  0x3f   : > { %1326 = vmatprep.subr.mxu0 %v1561_v3  ;;  %1337 = vmatprep.subr.mxu1 %v1561_v3  ;;  %v561_v11 = vld [vmem:[%s1943_s23] sm:$0xff] }
  0x40   : > { %1327 = vmatpush3.msra.mxu0 %v564_v6  ;;  %1338 = vmatpush3.msra.mxu1 %v568_v7  ;;  %v571_v15 = vld [vmem:[%s1748_s30] sm:$0xff]  ;;  %s1945_s30 = scalar_lea.vmem %s1904_s5, %s1710_s16 }
  0x41   : > { %1328 = vmatprep.subr.mxu0 %v1561_v3  ;;  %1339 = vmatprep.subr.mxu1 %v1561_v3  ;;  %v562_v16 = vld [vmem:[%s1944_s12] sm:$0xff]  ;;  %v821_v28 = vstv %s818_s21 }
  0x42   : > { %1329 = vmatpush3.msra.mxu0 %v563_v8  ;;  %1330 = vmatprep.mubr.msk.f32.mxu0 %vm1562_vm2, %v1561_v3  ;;  %v1282_v17 = vld [vmem:[%s1945_s30] ss:$0 sm:$0xff]  ;;  %vm822_vm4 = vcmp.ge.s32.totalorder %v820_v27, %v821_v28 }
  0x43   : > { %1340 = vmatpush3.msra.mxu1 %v567_v9  ;;  %1341 = vmatprep.mubr.msk.f32.mxu1 %vm1562_vm2, %v1561_v3  ;;  %v1284_v18 = vld [vmem:[%s541_s0] ss:$0 sm:$0xff]  ;;  %v823_v29 = vsel %vm822_vm4, -1e+30, %v1561_v3 }
  0x44   : > { %1331 = vmatmul.mubr.msk.f32.vlgmr.msra.gmra.mxu0 %vm583_vm1, %v560_v10  ;;  %1342 = vmatmul.mubr.msk.f32.vlgmr.msra.gmra.mxu1 %vm583_vm1, %v561_v11  ;;  %v1286_v34 = vld [vmem:[%s549_s4] ss:$0 sm:$0xff] }
  0x45   : > { %1355 = vmatprep.subr.mxu1 %v1561_v3  ;;  %1357 = vmatprep.mubr.msk.f32.mxu1 %vm1562_vm2, %v1561_v3  ;;  %v575_v44 = vld [vmem:[%s1758_s24] sm:$0xff]  ;;  %s1946_s24 = sld [smem:[#allocation21_spill]] (!%p1292_p6) }
  0x46   : > { %1344 = vmatprep.subr.mxu0 %v1561_v3  ;;  %1352 = vmatprep.mubr.msk.f32.mxu0 %vm1562_vm2, %v1561_v3  ;;  %v1065_v56 = vld [vmem:[#allocation2] sm:$0xff] }
  0x47   : > { %1345 = vmatpush3.msra.mxu0 %v574_v12 }
  0x48   : > { %1346 = vmatprep.subr.mxu0 %v1561_v3 }
  0x49   : > { %1347 = vmatpush3.msra.mxu0 %v573_v13 }
  0x4a   : > { %1348 = vmatprep.subr.mxu0 %v1561_v3 }
  0x4b   : > { %1349 = vmatpush3.msra.mxu0 %v572_v14 }
  0x4c   : > { %1350 = vmatprep.subr.mxu0 %v1561_v3 }
  0x4d   : > { %1351 = vmatpush3.msra.mxu0 %v571_v15 }
  0x4e   : > { %1353 = vmatmul.mubr.msk.f32.vlgmr.msra.gmra.mxu0 %vm583_vm1, %v562_v16  ;;  %1365 = vmatprep.subr.mxu0 %v1561_v3 }
  0x4f   : > { %1367 = vmatprep.mubr.msk.f32.mxu0 %vm1562_vm2, %v1561_v3  ;;  %1366 = vmatpush3.msra.mxu0 %v575_v44 }
 0x104   : > { %v653_v19 = vpop.f32.mrf.mxu0  ;;  %v734_v20 = vpop.f32.mrf.mxu1 }
 0x105   : > { %v654_v21 = vadd.f32 %v1282_v17, %v653_v19  ;;  %v735_v22 = vadd.f32 %v1284_v18, %v734_v20 }
 0x106   : > { %v1332_v23 = vpop.f32.mrf.mxu0  ;;  %v1343_v24 = vpop.f32.mrf.mxu1 }
 0x107   : > { %v657_v25 = vmul.f32 0.35355338, %v654_v21  ;;  %1356 = vmatpush3.xpose.msk.msra.mxu1 %vm824_vm3, %v735_v22 }
 0x108   : > { %1360 = vmatprep.subr.mxu1 %v1561_v3 }
 0x10a   : > { %1358 = vmatmul.mubr.msk.f32.vlgmr.msra.gmra.mxu1 %vm824_vm3, %v657_v25 }
 0x10b   : > { %1362 = vmatprep.mubr.msk.f32.mxu1 %vm1562_vm2, %v1561_v3 }
 0x10e   : > { %v814_v35 = vpop.f32.mrf.mxu0 }
 0x10f   : > { %v815_v36 = vadd.f32 %v1286_v34, %v814_v35 }
 0x110   : > { %v1354_v37 = vpop.f32.mrf.mxu0 }
 0x111   : > { %1361 = vmatpush3.msra.mxu1 %v815_v36 }
 0x1ca   : > { %v897_v30 = vpop.f32.mrf.mxu1 }
 0x1cb   : > { %v898_v31 = vadd.f32 %v897_v30, %v823_v29 }
 0x1cc   : > { %v1359_v32 = vpop.f32.mrf.mxu1 }
 0x1cd   : > { %v901_v33 = vsel %vm824_vm3, %v898_v31, -inf }
 0x1ce   : > { %902 = vmax.xlane.f32.xlu0 %v901_v33 }
 0x257   : > { %v903_v38 = vpop.xlane.xlu0 %902 }
 0x258   : > { %v904_v39 = vmax.f32 %v903_v38, -1e+30 }
 0x25a   : > { %v908_v40 = vsub.f32 %v898_v31, %v904_v39  ;;  %v905_v45 = vsub.f32 -1e+30, %v904_v39 }
 0x25c   : > { %v909_v41 = vmul.f32 1.442695, %v908_v40  ;;  %v906_v46 = vmul.f32 1.442695, %v905_v45 }
 0x25e   : > { %1445 = vpow2.f32 %v909_v41 }
 0x25f   : > { %1447 = vpow2.f32 %v906_v46 }
 0x26b   : > { %v1446_v42 = vpop.eup %1445 }
 0x26c   : > { %1363 = vmatmul.mubr.msk.f32.vlgmr.msra.gmra.mxu1 %vm824_vm3, %v1446_v42  ;;  %v912_v43 = vsel %vm824_vm3, %v1446_v42, 0.0  ;;  %v1448_v47 = vpop.eup %1447 }
 0x26d   : > { %913 = vadd.xlane.f32.xlu0 %v912_v43  ;;  %v911_v49 = vmul.f32 0.0, %v1448_v47 }
 0x2f6   : > { %v914_v48 = vpop.xlane.xlu0 %913 }
 0x2f7   : > { %v915_v50 = vadd.f32 %v914_v48, %v911_v49 }
 0x2f9   : > { %1449 = vrcp.f32 %v915_v50 }
 0x306   : > { %v1450_v53 = vpop.eup %1449 }
 0x32c   : > { %v985_v51 = vpop.f32.mrf.mxu1 }
 0x32d   : > { %v989_v52 = vadd.f32 %v985_v51, %v911_v49 }
 0x32e   : > { %v1364_v54 = vpop.f32.mrf.mxu1 }
 0x32f   : > { %v991_v55 = vmul.f32 %v1450_v53, %v989_v52 }
 0x331   : > { %1368 = vmatmul.mubr.msk.f32.vlgmr.msra.gmra.mxu0 %vm824_vm3, %v991_v55 }
 0x3f0   : > { %1071 = sbr.rel (%p1292_p6) target bundleno = 1023 (0x3ff), region = 72 }
 0x3f1   : > { %v1061_v57 = vpop.f32.mrf.mxu0 }
 0x3f2   : > { %v1066_v58 = vadd.f32 %v1065_v56, %v1061_v57 }
 0x3f3   : > { %v1369_v59 = vpop.f32.mrf.mxu0 }
 0x3f4   : > { %1067 = vst.msk [vmem:[#allocation2] sm:$0xff] %vm583_vm1, %v1066_v58 }
 0x3f5   : > { %v1293_v61 = vld [vmem:[%s1946_s24] ss:$0 sm:$0xff] }
 0x3fb   : > { %v1072_v60 = vld [vmem:[#allocation2] sm:$0xff] }
 0x3fc   : > { %v1080_v62 = vadd.f32 %v1293_v61, %v1072_v60 }
 0x3fe   : > { %1081 = vst.msk [vmem:[%s513_s22] sm:$0xff] %vm583_vm1, %v1080_v62 }
 0x3ff PF: > { %s1947_s18 = sld [smem:[#allocation10_spill]]  ;;  %s1295_s17 = sshll.u32 %s1545_s29, 7 }
 0x400   : > { %s1949_s28 = sld [smem:[#allocation22_spill]]  ;;  %s1096_s14 = sshll.u32 %s513_s22, 4  ;;  %s1097_s14 = int_to_ptr.vmem [resolvable:$true] %s1096_s14 }
 0x401   : > { %s1463_s19 = scalar_lea.vmem %s1097_s14, 128  ;;  %s1563_s26 = smov [#allocation5]  }
 0x402   : > { %p1464_p7 = scmp.ne.s32.totalorder %s1097_s14, %s1463_s19  ;;  %s1467_s21 = sshll.u32 %s1563_s26, 4  ;;  %s1468_s21 = int_to_ptr.vmem [resolvable:$false] %s1467_s21 }
 0x403   : > { %s1469_s0 = scalar_lea.vmem %s1468_s21, 256  ;;  %p1470_p11 = scmp.lt.s32.totalorder %s1097_s14, %s1468_s21 }
 0x404   : > { %p1465_p9 = pnand %p1464_p7, %p1681_p8  ;;  %p1471_p12 = scmp.lt.s32.totalorder %s1469_s0, %s1463_s19 }
 0x405   : > { %s1951_s27 = sand.u32 1, %s1947_s18  }
 0x406   : > { %s1950_s15 = smov %s1949_s28  ;;  %s1094_s12 = scalar_lea.hbm %s1949_s28, %s1295_s17 }
 0x407   : > { %s1083_s30 = scalar_lea.sflag [#allocation6], %s1951_s27  ;;  %p1466_p10 = pneg %p1465_p9 }
 0x408   : > { %p1472_p13 = por %p1471_p12, %p1470_p11 }
 0x40a   : > { %p1473_p1 = pnand %p1472_p13, %p1466_p10 }
 0x40c   : > { %1476 = shalt.err (!%p1473_p1)
}
 0x40d   : > { %s1477_s29 = scalar_lea.hbm %s1094_s12, 128  ;;  %s1481_s20 = scalar_lea.hbm %s1950_s15, 256 }
 0x40e   : > { %p1478_p2 = scmp.ne.s32.totalorder %s1094_s12, %s1477_s29  ;;  %p1482_p5 = scmp.lt.s32.totalorder %s1094_s12, %s1950_s15 }
 0x40f   : > { %p1483_p6 = scmp.lt.s32.totalorder %s1481_s20, %s1477_s29 }
 0x410   : > { %p1479_p3 = pnand %p1478_p2, %p1681_p8 }
 0x411   : > { %p1484_p7 = por %p1483_p6, %p1482_p5 }
 0x412   : > { %p1480_p4 = pneg %p1479_p3 }
 0x414   : > { %p1485_p9 = pnand %p1484_p7, %p1480_p4 }
 0x416   : > { %1488 = shalt.err (!%p1485_p9)
}
 0x417   : > { %1370 = dma.vmem_to_hbm [thread:$0]  (%p1681_p8), %s1097_s14, 128, %s1094_s12, %s1083_s30  }
 0x418 PF: > { %s1952_s24 = sld [smem:[#allocation14_spill]] }
 0x419   : > { %s1953_s18 = sld [smem:[#allocation9_spill]] }
 0x41e   : > { %p1376_p10 = scmp.ge.s32.totalorder %s1952_s24, 2 }
 0x41f   : > { %s1108_s23 = sand.u32 1, %s1953_s18  }
 0x420   : > { %p1373_p11 = pnand %p1376_p10, %p1691_p0  ;;  %s1109_s11 = scalar_lea.sflag [#allocation6], %s1108_s23 }
 0x422   : > { %p1374_p12 = pneg %p1373_p11 }
 0x424   : > { %1524 = dma.done.wait (%p1374_p12), %s1109_s11, 128  }
 0x425   : > { %1526 = vsyncadd (%p1374_p12), %s1109_s11, 4294967168  ;;  %s31_s14 = sadd.s32 1, %s1952_s24   ;;  %s1955_s26 = sld [smem:[#allocation10_spill]] }
 0x426   : > { %p28_p13 = scmp.ge.s32.totalorder %s31_s14, 10   ;;  %s1956_s27 = sld [smem:[#allocation11_spill]] }
 0x427   : > { %s1957_s0 = sld [smem:[#allocation19_spill]] }
 0x428   : > { %s1958_s28 = sld [smem:[#allocation12_spill]]  ;;  %30 = sbr.rel (!%p28_p13) target bundleno = 21 (0x15), region = 134 }
 0x429   : > { %s1959_s29 = sld [smem:[#allocation13_spill]] }
 0x42a   : > { %s1960_s30 = sld [smem:[#allocation15_spill]] }
 0x42b   : > { %s1961_s13 = sld [smem:[#allocation17_spill]] }
 0x42d   :  { %1114 = vsyncpa [#allocation6], 1 }
 0x42e   :  { %1116 = vsyncpa [#allocation6 + $0x1], 1 }

</bundles_post_ra>
